<compile_context>
chip_gen: v7x
topology: tpu7x:2x2x1
jax: 0.10.0
libtpu: 0.0.40
codegen_flags: <defaults>
</compile_context>

<pallas_src>
import functools

import jax
import jax.numpy as jnp
from jax.experimental import pallas as pl
from jax.experimental.pallas import tpu as pltpu


def _pick_col_tile(total, candidates=(2048, 1024, 512, 256, 128)):
    """Largest 128-multiple tile that divides `total` and gives >=2 blocks."""
    for t in candidates:
        if total % t == 0 and total // t >= 2:
            return t
    return total


def gcn_forward(x, support, weight, bias, order=2):
    """Forward pass of the Graph WaveNet `gcn` block.

    x:       (N, C, V, L) float32
    support: list of S adjacency matrices, each (V, V) float32
    weight:  (C_out, (order*S + 1) * C) float32  -- 1x1 Conv2d weight
    bias:    (C_out,) float32
    returns: (N, C_out, V, L) float32
    """
    n, c_in, v, l = x.shape
    s_len = len(support)
    g = order * s_len + 1
    c_out = weight.shape[0]
    assert weight.shape[1] == g * c_in

    # ---- token (= n*l) tiling: 128-aligned when the problem is big enough --
    nl = n * l
    if nl >= 512:
        tb = 512
    elif nl >= 128:
        tb = 128
    else:
        tb = nl
    nlp = pl.cdiv(nl, tb) * tb

    # ---- one-time layout plumbing, bf16 at the kernel boundary -------------
    x2 = jnp.transpose(x, (1, 2, 0, 3)).reshape(c_in, v, nl)
    if nlp != nl:
        x2 = jnp.pad(x2, ((0, 0), (0, 0), (0, nlp - nl)))
    x2 = x2.astype(jnp.bfloat16)                         # (C, V, NLp)
    # A^T hoisted & stacked once for all supports: (S*V, V).
    at_all = jnp.concatenate([jnp.transpose(a) for a in support],
                             axis=0).astype(jnp.bfloat16)
    w2 = weight.astype(jnp.bfloat16)                     # (C_out, G*C)
    b1 = bias.astype(jnp.float32)                        # (C_out,) -> SMEM

    # ==================== kernel 1: fused diffusion hops ====================
    def hops_kernel(x_ref, at_ref, h_ref):
        # x_ref : (1, V, TB)     bf16  one input channel, one token block
        # at_ref: (S*V, V)       bf16  stacked A^T, resident across the grid
        # h_ref : (G, 1, V, TB)  bf16  all hop results for this (c, block)
        xc = x_ref[0]                                  # (V, TB)
        h_ref[0, 0] = xc                               # group 0: identity (x)
        ats = at_ref[...]                              # (S*V, V)
        # hop 1 for every support in a single MXU pass: (S*V, V) @ (V, TB)
        h1 = jnp.dot(ats, xc, preferred_element_type=jnp.float32)
        for s in range(s_len):
            cur = h1[s * v:(s + 1) * v, :].astype(h_ref.dtype)
            h_ref[1 + s * order, 0] = cur
            for k in range(1, order):
                cur = jnp.dot(ats[s * v:(s + 1) * v, :], cur,
                              preferred_element_type=jnp.float32
                              ).astype(h_ref.dtype)
                h_ref[1 + s * order + k, 0] = cur

    nblk = nlp // tb
    hop_cost = pl.CostEstimate(
        flops=2 * s_len * order * v * v * c_in * nlp,
        transcendentals=0,
        bytes_accessed=(x2.size + at_all.size + g * c_in * v * nlp) * 2)

    h_all = pl.pallas_call(
        hops_kernel,
        out_shape=jax.ShapeDtypeStruct((g, c_in, v, nlp), jnp.bfloat16),
        grid=(c_in, nblk),
        in_specs=[
            pl.BlockSpec((1, v, tb), lambda c, j: (c, 0, j)),
            pl.BlockSpec((s_len * v, v), lambda c, j: (0, 0)),
        ],
        out_specs=pl.BlockSpec((g, 1, v, tb), lambda c, j: (0, c, 0, j)),
        compiler_params=pltpu.CompilerParams(
            dimension_semantics=("parallel", "parallel"),
            vmem_limit_bytes=64 * 1024 * 1024),
        cost_estimate=hop_cost,
    )(x2, at_all)

    # The channel concat IS kernel 1's output layout; this reshape is free.
    h2d = h_all.reshape(g * c_in, v * nlp)               # (G*C, V*NLp)

    # ==================== kernel 2: 1x1 conv (mlp) + bias ===================
    m2 = v * nlp
    tn = _pick_col_tile(m2)

    def mlp_kernel(b_ref, w_ref, h_ref, o_ref):
        # b_ref: (C_out,) f32 in SMEM; w_ref: (C_out, G*C) bf16 (resident);
        # h_ref: (G*C, TN) bf16; o_ref: (C_out, TN) f32
        acc = jnp.dot(w_ref[...], h_ref[...],
                      preferred_element_type=jnp.float32)   # (C_out, TN)
        for o in range(c_out):                              # bias from SMEM
            o_ref[o:o + 1, :] = acc[o:o + 1, :] + b_ref[o]

    mlp_cost = pl.CostEstimate(
        flops=2 * c_out * g * c_in * m2,
        transcendentals=0,
        bytes_accessed=w2.size * 2 + h2d.size * 2 + c_out * m2 * 4 + c_out * 4)

    y2d = pl.pallas_call(
        mlp_kernel,
        out_shape=jax.ShapeDtypeStruct((c_out, m2), jnp.float32),
        grid=(m2 // tn,),
        in_specs=[
            pl.BlockSpec(memory_space=pltpu.MemorySpace.SMEM),
            pl.BlockSpec((c_out, g * c_in), lambda j: (0, 0)),
            pl.BlockSpec((g * c_in, tn), lambda j: (0, j)),
        ],
        out_specs=pl.BlockSpec((c_out, tn), lambda j: (0, j)),
        compiler_params=pltpu.CompilerParams(
            dimension_semantics=("parallel",),
            vmem_limit_bytes=64 * 1024 * 1024),
        cost_estimate=mlp_cost,
    )(b1, w2, h2d)

    # Final layout plumbing back to NCVL (one transpose, same as the module).
    y = y2d.reshape(c_out, v, nlp)[:, :, :nl].reshape(c_out, v, n, l)
    y = jnp.transpose(y, (2, 0, 1, 3))                   # (N, C_out, V, L)
    # TODO(synk): F.dropout with training=True not reproduced; eval-mode
    # dropout (identity) is applied here.
    return y


# ----------------------------------- main -----------------------------------

if __name__ == "__main__":
    N, C_IN, V, L = 2, 4, 16, 8
    SUPPORT_LEN, ORDER = 3, 2
    C_OUT = 8
    C_TOTAL = (ORDER * SUPPORT_LEN + 1) * C_IN            # 28

    key = jax.random.PRNGKey(0)
    kx, kw, kb, *ksup = jax.random.split(key, 3 + SUPPORT_LEN)

    x = jax.random.normal(kx, (N, C_IN, V, L), dtype=jnp.float32)
    support = [jax.random.normal(k, (V, V), dtype=jnp.float32) * 0.1
               for k in ksup]
    weight = jax.random.normal(kw, (C_OUT, C_TOTAL), dtype=jnp.float32) * 0.05
    bias = jax.random.normal(kb, (C_OUT,), dtype=jnp.float32) * 0.05

    gcn_fn = jax.jit(functools.partial(gcn_forward, order=ORDER))
    out = jax.block_until_ready(gcn_fn(x, support, weight, bias))
    assert out.shape == (N, C_OUT, V, L), out.shape

    # pure-JAX f32 reference check
    ref_list = [x]
    for a in support:
        r1 = jnp.einsum('ncvl,vw->ncwl', x, a)
        ref_list.append(r1)
        for _ in range(2, ORDER + 1):
            r2 = jnp.einsum('ncvl,vw->ncwl', r1, a)
            ref_list.append(r2)
            r1 = r2
    href = jnp.concatenate(ref_list, axis=1)
    ref = jnp.einsum('oc,ncvl->novl', weight, href) + bias[None, :, None, None]
    # bf16 MXU inputs with f32 accumulation -> loosened tolerance vs f32 ref
    err = float(jnp.max(jnp.abs(out - ref)))
    assert jnp.allclose(out, ref, atol=5e-2, rtol=5e-2), err

    print("KERNEL_OK")
</pallas_src>

<mosaic_0001>
module attributes {stable_mosaic.version = 11 : i64} {
  func.func @hops_kernel(%arg0: i32, %arg1: i32, %arg2: memref<1x16x16xbf16, #tpu.memory_space<vmem>>, %arg3: memref<48x16xbf16, #tpu.memory_space<vmem>>, %arg4: memref<7x1x16x16xbf16, #tpu.memory_space<vmem>>) attributes {dimension_semantics = [#tpu.dimension_semantics<parallel>, #tpu.dimension_semantics<parallel>], iteration_bounds = array<i64: 4, 1>, scalar_prefetch = 0 : i64, scratch_operands = 0 : i64, tpu.core_type = #tpu.core_type<tc>, window_params = [{transform_indices = @transform_0, window_bounds = array<i64: 1, 16, 16>}, {pipeline_mode = #tpu.pipeline_mode<synchronous>, transform_indices = @transform_1, window_bounds = array<i64: 48, 16>}, {transform_indices = @transform_2, window_bounds = array<i64: 7, 1, 16, 16>}]} {
    %c0 = arith.constant 0 : index
    %c0_0 = arith.constant 0 : index
    %c0_1 = arith.constant 0 : index
    %0 = vector.load %arg2[%c0, %c0_0, %c0_1] : memref<1x16x16xbf16, #tpu.memory_space<vmem>>, vector<1x16x16xbf16>
    %1 = vector.shape_cast %0 : vector<1x16x16xbf16> to vector<16x16xbf16>
    %c0_2 = arith.constant 0 : index
    %c0_3 = arith.constant 0 : index
    %c0_4 = arith.constant 0 : index
    %c0_5 = arith.constant 0 : index
    %2 = vector.load %arg4[%c0_2, %c0_3, %c0_4, %c0_5] : memref<7x1x16x16xbf16, #tpu.memory_space<vmem>>, vector<1x1x16x16xbf16>
    %3 = vector.shape_cast %2 : vector<1x1x16x16xbf16> to vector<16x16xbf16>
    %4 = vector.shape_cast %1 : vector<16x16xbf16> to vector<1x1x16x16xbf16>
    tpu.vector_store %arg4[%c0_2, %c0_3, %c0_4, %c0_5], %4 {strides = array<i32>} : memref<7x1x16x16xbf16, #tpu.memory_space<vmem>>, vector<1x1x16x16xbf16>,
    %c0_6 = arith.constant 0 : index
    %c0_7 = arith.constant 0 : index
    %5 = vector.load %arg3[%c0_6, %c0_7] : memref<48x16xbf16, #tpu.memory_space<vmem>>, vector<48x16xbf16>
    %cst = arith.constant dense<0.000000e+00> : vector<48x16xf32>
    %6 = tpu.matmul %5, %1, %cst {dimension_numbers = #tpu.dot_dimension_numbers<[1], [0], [0], [1], [0, 0, 1, 1], [], []>} : vector<48x16xbf16>, vector<16x16xbf16>, vector<48x16xf32> -> vector<48x16xf32>
    %7 = vector.extract_strided_slice %6 {offsets = [0, 0], sizes = [16, 16], strides = [1, 1]} : vector<48x16xf32> to vector<16x16xf32>
    %8 = arith.truncf %7 : vector<16x16xf32> to vector<16x16xbf16>
    %c1 = arith.constant 1 : index
    %c0_8 = arith.constant 0 : index
    %c0_9 = arith.constant 0 : index
    %c0_10 = arith.constant 0 : index
    %9 = vector.load %arg4[%c1, %c0_8, %c0_9, %c0_10] : memref<7x1x16x16xbf16, #tpu.memory_space<vmem>>, vector<1x1x16x16xbf16>
    %10 = vector.shape_cast %9 : vector<1x1x16x16xbf16> to vector<16x16xbf16>
    %11 = vector.shape_cast %8 : vector<16x16xbf16> to vector<1x1x16x16xbf16>
    tpu.vector_store %arg4[%c1, %c0_8, %c0_9, %c0_10], %11 {strides = array<i32>} : memref<7x1x16x16xbf16, #tpu.memory_space<vmem>>, vector<1x1x16x16xbf16>,
    %12 = vector.extract_strided_slice %5 {offsets = [0, 0], sizes = [16, 16], strides = [1, 1]} : vector<48x16xbf16> to vector<16x16xbf16>
    %cst_11 = arith.constant dense<0.000000e+00> : vector<16x16xf32>
    %13 = tpu.matmul %12, %8, %cst_11 {dimension_numbers = #tpu.dot_dimension_numbers<[1], [0], [0], [1], [0, 0, 1, 1], [], []>} : vector<16x16xbf16>, vector<16x16xbf16>, vector<16x16xf32> -> vector<16x16xf32>
    %14 = arith.truncf %13 : vector<16x16xf32> to vector<16x16xbf16>
    %c2 = arith.constant 2 : index
    %c0_12 = arith.constant 0 : index
    %c0_13 = arith.constant 0 : index
    %c0_14 = arith.constant 0 : index
    %15 = vector.load %arg4[%c2, %c0_12, %c0_13, %c0_14] : memref<7x1x16x16xbf16, #tpu.memory_space<vmem>>, vector<1x1x16x16xbf16>
    %16 = vector.shape_cast %15 : vector<1x1x16x16xbf16> to vector<16x16xbf16>
    %17 = vector.shape_cast %14 : vector<16x16xbf16> to vector<1x1x16x16xbf16>
    tpu.vector_store %arg4[%c2, %c0_12, %c0_13, %c0_14], %17 {strides = array<i32>} : memref<7x1x16x16xbf16, #tpu.memory_space<vmem>>, vector<1x1x16x16xbf16>,
    %18 = vector.extract_strided_slice %6 {offsets = [16, 0], sizes = [16, 16], strides = [1, 1]} : vector<48x16xf32> to vector<16x16xf32>
    %19 = arith.truncf %18 : vector<16x16xf32> to vector<16x16xbf16>
    %c3 = arith.constant 3 : index
    %c0_15 = arith.constant 0 : index
    %c0_16 = arith.constant 0 : index
    %c0_17 = arith.constant 0 : index
    %20 = vector.load %arg4[%c3, %c0_15, %c0_16, %c0_17] : memref<7x1x16x16xbf16, #tpu.memory_space<vmem>>, vector<1x1x16x16xbf16>
    %21 = vector.shape_cast %20 : vector<1x1x16x16xbf16> to vector<16x16xbf16>
    %22 = vector.shape_cast %19 : vector<16x16xbf16> to vector<1x1x16x16xbf16>
    tpu.vector_store %arg4[%c3, %c0_15, %c0_16, %c0_17], %22 {strides = array<i32>} : memref<7x1x16x16xbf16, #tpu.memory_space<vmem>>, vector<1x1x16x16xbf16>,
    %23 = vector.extract_strided_slice %5 {offsets = [16, 0], sizes = [16, 16], strides = [1, 1]} : vector<48x16xbf16> to vector<16x16xbf16>
    %cst_18 = arith.constant dense<0.000000e+00> : vector<16x16xf32>
    %24 = tpu.matmul %23, %19, %cst_18 {dimension_numbers = #tpu.dot_dimension_numbers<[1], [0], [0], [1], [0, 0, 1, 1], [], []>} : vector<16x16xbf16>, vector<16x16xbf16>, vector<16x16xf32> -> vector<16x16xf32>
    %25 = arith.truncf %24 : vector<16x16xf32> to vector<16x16xbf16>
    %c4 = arith.constant 4 : index
    %c0_19 = arith.constant 0 : index
    %c0_20 = arith.constant 0 : index
    %c0_21 = arith.constant 0 : index
    %26 = vector.load %arg4[%c4, %c0_19, %c0_20, %c0_21] : memref<7x1x16x16xbf16, #tpu.memory_space<vmem>>, vector<1x1x16x16xbf16>
    %27 = vector.shape_cast %26 : vector<1x1x16x16xbf16> to vector<16x16xbf16>
    %28 = vector.shape_cast %25 : vector<16x16xbf16> to vector<1x1x16x16xbf16>
    tpu.vector_store %arg4[%c4, %c0_19, %c0_20, %c0_21], %28 {strides = array<i32>} : memref<7x1x16x16xbf16, #tpu.memory_space<vmem>>, vector<1x1x16x16xbf16>,
    %29 = vector.extract_strided_slice %6 {offsets = [32, 0], sizes = [16, 16], strides = [1, 1]} : vector<48x16xf32> to vector<16x16xf32>
    %30 = arith.truncf %29 : vector<16x16xf32> to vector<16x16xbf16>
    %c5 = arith.constant 5 : index
    %c0_22 = arith.constant 0 : index
    %c0_23 = arith.constant 0 : index
    %c0_24 = arith.constant 0 : index
    %31 = vector.load %arg4[%c5, %c0_22, %c0_23, %c0_24] : memref<7x1x16x16xbf16, #tpu.memory_space<vmem>>, vector<1x1x16x16xbf16>
    %32 = vector.shape_cast %31 : vector<1x1x16x16xbf16> to vector<16x16xbf16>
    %33 = vector.shape_cast %30 : vector<16x16xbf16> to vector<1x1x16x16xbf16>
    tpu.vector_store %arg4[%c5, %c0_22, %c0_23, %c0_24], %33 {strides = array<i32>} : memref<7x1x16x16xbf16, #tpu.memory_space<vmem>>, vector<1x1x16x16xbf16>,
    %34 = vector.extract_strided_slice %5 {offsets = [32, 0], sizes = [16, 16], strides = [1, 1]} : vector<48x16xbf16> to vector<16x16xbf16>
    %cst_25 = arith.constant dense<0.000000e+00> : vector<16x16xf32>
    %35 = tpu.matmul %34, %30, %cst_25 {dimension_numbers = #tpu.dot_dimension_numbers<[1], [0], [0], [1], [0, 0, 1, 1], [], []>} : vector<16x16xbf16>, vector<16x16xbf16>, vector<16x16xf32> -> vector<16x16xf32>
    %36 = arith.truncf %35 : vector<16x16xf32> to vector<16x16xbf16>
    %c6 = arith.constant 6 : index
    %c0_26 = arith.constant 0 : index
    %c0_27 = arith.constant 0 : index
    %c0_28 = arith.constant 0 : index
    %37 = vector.load %arg4[%c6, %c0_26, %c0_27, %c0_28] : memref<7x1x16x16xbf16, #tpu.memory_space<vmem>>, vector<1x1x16x16xbf16>
    %38 = vector.shape_cast %37 : vector<1x1x16x16xbf16> to vector<16x16xbf16>
    %39 = vector.shape_cast %36 : vector<16x16xbf16> to vector<1x1x16x16xbf16>
    tpu.vector_store %arg4[%c6, %c0_26, %c0_27, %c0_28], %39 {strides = array<i32>} : memref<7x1x16x16xbf16, #tpu.memory_space<vmem>>, vector<1x1x16x16xbf16>,
    return
  }
  func.func @transform_0(%arg0: i32, %arg1: i32) -> (i32, i32, i32) {
    %c0_i32 = arith.constant 0 : i32
    %c0_i32_0 = arith.constant 0 : i32
    return %arg0, %c0_i32, %arg1 : i32, i32, i32
  }
  func.func @transform_1(%arg0: i32, %arg1: i32) -> (i32, i32) {
    %c0_i32 = arith.constant 0 : i32
    %c0_i32_0 = arith.constant 0 : i32
    %c0_i32_1 = arith.constant 0 : i32
    return %c0_i32, %c0_i32_0 : i32, i32
  }
  func.func @transform_2(%arg0: i32, %arg1: i32) -> (i32, i32, i32, i32) {
    %c0_i32 = arith.constant 0 : i32
    %c0_i32_0 = arith.constant 0 : i32
    %c0_i32_1 = arith.constant 0 : i32
    return %c0_i32, %arg0, %c0_i32_0, %arg1 : i32, i32, i32, i32
  }
}

module attributes {stable_mosaic.version = 11 : i64} {
  func.func @mlp_kernel(%arg0: i32, %arg1: memref<8xf32, #tpu.memory_space<smem>>, %arg2: memref<8x28xbf16, #tpu.memory_space<vmem>>, %arg3: memref<28x128xbf16, #tpu.memory_space<vmem>>, %arg4: memref<8x128xf32, #tpu.memory_space<vmem>>) attributes {dimension_semantics = [#tpu.dimension_semantics<parallel>], iteration_bounds = array<i64: 2>, scalar_prefetch = 0 : i64, scratch_operands = 0 : i64, tpu.core_type = #tpu.core_type<tc>, window_params = [{transform_indices = @transform_0, window_bounds = array<i64: 8>}, {pipeline_mode = #tpu.pipeline_mode<synchronous>, transform_indices = @transform_1, window_bounds = array<i64: 8, 28>}, {transform_indices = @transform_2, window_bounds = array<i64: 28, 128>}, {transform_indices = @transform_3, window_bounds = array<i64: 8, 128>}]} {
    %c0 = arith.constant 0 : index
    %c0_0 = arith.constant 0 : index
    %0 = vector.load %arg2[%c0, %c0_0] : memref<8x28xbf16, #tpu.memory_space<vmem>>, vector<8x28xbf16>
    %c0_1 = arith.constant 0 : index
    %c0_2 = arith.constant 0 : index
    %1 = vector.load %arg3[%c0_1, %c0_2] : memref<28x128xbf16, #tpu.memory_space<vmem>>, vector<28x128xbf16>
    %cst = arith.constant dense<0.000000e+00> : vector<8x128xf32>
    %2 = tpu.matmul %0, %1, %cst {dimension_numbers = #tpu.dot_dimension_numbers<[1], [0], [0], [1], [0, 0, 1, 1], [], []>} : vector<8x28xbf16>, vector<28x128xbf16>, vector<8x128xf32> -> vector<8x128xf32>
    %3 = vector.extract_strided_slice %2 {offsets = [0, 0], sizes = [1, 128], strides = [1, 1]} : vector<8x128xf32> to vector<1x128xf32>
    %c0_3 = arith.constant 0 : index
    %4 = memref.load %arg1[%c0_3] : memref<8xf32, #tpu.memory_space<smem>>
    %5 = vector.broadcast %4 : f32 to vector<1x128xf32>
    %6 = arith.addf %3, %5 : vector<1x128xf32>
    %c0_4 = arith.constant 0 : index
    %c0_5 = arith.constant 0 : index
    %7 = vector.load %arg4[%c0_4, %c0_5] : memref<8x128xf32, #tpu.memory_space<vmem>>, vector<1x128xf32>
    tpu.vector_store %arg4[%c0_4, %c0_5], %6 {strides = array<i32>} : memref<8x128xf32, #tpu.memory_space<vmem>>, vector<1x128xf32>,
    %8 = vector.extract_strided_slice %2 {offsets = [1, 0], sizes = [1, 128], strides = [1, 1]} : vector<8x128xf32> to vector<1x128xf32>
    %c1 = arith.constant 1 : index
    %9 = memref.load %arg1[%c1] : memref<8xf32, #tpu.memory_space<smem>>
    %10 = vector.broadcast %9 : f32 to vector<1x128xf32>
    %11 = arith.addf %8, %10 : vector<1x128xf32>
    %c1_6 = arith.constant 1 : index
    %c0_7 = arith.constant 0 : index
    %12 = vector.load %arg4[%c1_6, %c0_7] : memref<8x128xf32, #tpu.memory_space<vmem>>, vector<1x128xf32>
    tpu.vector_store %arg4[%c1_6, %c0_7], %11 {strides = array<i32>} : memref<8x128xf32, #tpu.memory_space<vmem>>, vector<1x128xf32>,
    %13 = vector.extract_strided_slice %2 {offsets = [2, 0], sizes = [1, 128], strides = [1, 1]} : vector<8x128xf32> to vector<1x128xf32>
    %c2 = arith.constant 2 : index
    %14 = memref.load %arg1[%c2] : memref<8xf32, #tpu.memory_space<smem>>
    %15 = vector.broadcast %14 : f32 to vector<1x128xf32>
    %16 = arith.addf %13, %15 : vector<1x128xf32>
    %c2_8 = arith.constant 2 : index
    %c0_9 = arith.constant 0 : index
    %17 = vector.load %arg4[%c2_8, %c0_9] : memref<8x128xf32, #tpu.memory_space<vmem>>, vector<1x128xf32>
    tpu.vector_store %arg4[%c2_8, %c0_9], %16 {strides = array<i32>} : memref<8x128xf32, #tpu.memory_space<vmem>>, vector<1x128xf32>,
    %18 = vector.extract_strided_slice %2 {offsets = [3, 0], sizes = [1, 128], strides = [1, 1]} : vector<8x128xf32> to vector<1x128xf32>
    %c3 = arith.constant 3 : index
    %19 = memref.load %arg1[%c3] : memref<8xf32, #tpu.memory_space<smem>>
    %20 = vector.broadcast %19 : f32 to vector<1x128xf32>
    %21 = arith.addf %18, %20 : vector<1x128xf32>
    %c3_10 = arith.constant 3 : index
    %c0_11 = arith.constant 0 : index
    %22 = vector.load %arg4[%c3_10, %c0_11] : memref<8x128xf32, #tpu.memory_space<vmem>>, vector<1x128xf32>
    tpu.vector_store %arg4[%c3_10, %c0_11], %21 {strides = array<i32>} : memref<8x128xf32, #tpu.memory_space<vmem>>, vector<1x128xf32>,
    %23 = vector.extract_strided_slice %2 {offsets = [4, 0], sizes = [1, 128], strides = [1, 1]} : vector<8x128xf32> to vector<1x128xf32>
    %c4 = arith.constant 4 : index
    %24 = memref.load %arg1[%c4] : memref<8xf32, #tpu.memory_space<smem>>
    %25 = vector.broadcast %24 : f32 to vector<1x128xf32>
    %26 = arith.addf %23, %25 : vector<1x128xf32>
    %c4_12 = arith.constant 4 : index
    %c0_13 = arith.constant 0 : index
    %27 = vector.load %arg4[%c4_12, %c0_13] : memref<8x128xf32, #tpu.memory_space<vmem>>, vector<1x128xf32>
    tpu.vector_store %arg4[%c4_12, %c0_13], %26 {strides = array<i32>} : memref<8x128xf32, #tpu.memory_space<vmem>>, vector<1x128xf32>,
    %28 = vector.extract_strided_slice %2 {offsets = [5, 0], sizes = [1, 128], strides = [1, 1]} : vector<8x128xf32> to vector<1x128xf32>
    %c5 = arith.constant 5 : index
    %29 = memref.load %arg1[%c5] : memref<8xf32, #tpu.memory_space<smem>>
    %30 = vector.broadcast %29 : f32 to vector<1x128xf32>
    %31 = arith.addf %28, %30 : vector<1x128xf32>
    %c5_14 = arith.constant 5 : index
    %c0_15 = arith.constant 0 : index
    %32 = vector.load %arg4[%c5_14, %c0_15] : memref<8x128xf32, #tpu.memory_space<vmem>>, vector<1x128xf32>
    tpu.vector_store %arg4[%c5_14, %c0_15], %31 {strides = array<i32>} : memref<8x128xf32, #tpu.memory_space<vmem>>, vector<1x128xf32>,
    %33 = vector.extract_strided_slice %2 {offsets = [6, 0], sizes = [1, 128], strides = [1, 1]} : vector<8x128xf32> to vector<1x128xf32>
    %c6 = arith.constant 6 : index
    %34 = memref.load %arg1[%c6] : memref<8xf32, #tpu.memory_space<smem>>
    %35 = vector.broadcast %34 : f32 to vector<1x128xf32>
    %36 = arith.addf %33, %35 : vector<1x128xf32>
    %c6_16 = arith.constant 6 : index
    %c0_17 = arith.constant 0 : index
    %37 = vector.load %arg4[%c6_16, %c0_17] : memref<8x128xf32, #tpu.memory_space<vmem>>, vector<1x128xf32>
    tpu.vector_store %arg4[%c6_16, %c0_17], %36 {strides = array<i32>} : memref<8x128xf32, #tpu.memory_space<vmem>>, vector<1x128xf32>,
    %38 = vector.extract_strided_slice %2 {offsets = [7, 0], sizes = [1, 128], strides = [1, 1]} : vector<8x128xf32> to vector<1x128xf32>
    %c7 = arith.constant 7 : index
    %39 = memref.load %arg1[%c7] : memref<8xf32, #tpu.memory_space<smem>>
    %40 = vector.broadcast %39 : f32 to vector<1x128xf32>
    %41 = arith.addf %38, %40 : vector<1x128xf32>
    %c7_18 = arith.constant 7 : index
    %c0_19 = arith.constant 0 : index
    %42 = vector.load %arg4[%c7_18, %c0_19] : memref<8x128xf32, #tpu.memory_space<vmem>>, vector<1x128xf32>
    tpu.vector_store %arg4[%c7_18, %c0_19], %41 {strides = array<i32>} : memref<8x128xf32, #tpu.memory_space<vmem>>, vector<1x128xf32>,
    return
  }
  func.func @transform_0(%arg0: i32) -> i32 {
    %c0_i32 = arith.constant 0 : i32
    %c0_i32_0 = arith.constant 0 : i32
    return %c0_i32 : i32
  }
  func.func @transform_1(%arg0: i32) -> (i32, i32) {
    %c0_i32 = arith.constant 0 : i32
    %c0_i32_0 = arith.constant 0 : i32
    %c0_i32_1 = arith.constant 0 : i32
    return %c0_i32, %c0_i32_0 : i32, i32
  }
  func.func @transform_2(%arg0: i32) -> (i32, i32) {
    %c0_i32 = arith.constant 0 : i32
    %c0_i32_0 = arith.constant 0 : i32
    return %c0_i32, %arg0 : i32, i32
  }
  func.func @transform_3(%arg0: i32) -> (i32, i32) {
    %c0_i32 = arith.constant 0 : i32
    %c0_i32_0 = arith.constant 0 : i32
    return %c0_i32, %arg0 : i32, i32
  }
}

</mosaic_0001>

<bundles_post_ra>
// kernel: gcn_forward.3
= control target key start
LH: loop header
LB: loop body
LE: loop exit
PB: predicated region body
PF: predicated region fallthrough
CT: control target
= control target key end

     0   :  { %8 = vsyncpa [#allocation5], 0  ;;  %s933_s0 = inlined_call_operand.hbm [shape: f32[8], index: 0, kind: input, shape index: {}]   ;;  %s934_s1 = inlined_call_operand.hbm [shape: bf16[8,28], index: 1, kind: input, shape index: {}]   ;;  %s935_s2 = inlined_call_operand.hbm [shape: bf16[28,256], index: 2, kind: input, shape index: {}]   ;;  %s936_s3 = inlined_call_operand.hbm [shape: f32[8,256], index: 3, kind: output, shape index: {}]  }
   0x1   :  { %9 = vsyncpa [#allocation3], 0 }
   0x2   :  { %10 = vsyncpa [#allocation8], 0 }
   0x3   :  { %12 = vsyncpa [#allocation8 + $0x1], 0 }
   0x4   :  { %13 = vsyncpa [#allocation4], 0 }
   0x5   :  { %15 = vsyncpa [#allocation4 + $0x1], 0  ;;  %s705_s12 = smov 0   ;;  %s707_s13 = smov 0  }
   0x6   :  { %s709_s14 = smov 0   ;;  %s711_s15 = smov 0  }
   0x7 LB: > { %s726_s16 = sadd.s32 4294967295, %s674_s15   ;;  %s418_s17 = sadd.s32 4294967294, %s674_s15   ;;  %s674_s15 = sphi %s711_s15, %s964_s15   ;;  %s670_s14 = sphi %s709_s14, %s963_s14   ;;  %s666_s13 = sphi %s707_s13, %s962_s13   ;;  %s662_s12 = sphi %s705_s12, %s961_s12  }
   0x8   : > { %s730_s18 = sadd.s32 1, %s674_s15   ;;  %s70_s19 = sadd.s32 1, %s670_s14 }
   0x9   : > { %s67_s20 = ssub.s32 %s674_s15, %s730_s18  ;;  %p77_p0 = scmp.ne.s32.totalorder %s670_s14, %s666_s13 }
   0xa   : > { %p68_p1 = scmp.eq.s32.totalorder %s67_s20, 0  ;;  %p78_p2 = scmp.eq.s32.totalorder %s674_s15, 0 }
   0xb   : > { %p83_p3 = scmp.ne.s32.totalorder %s666_s13, %s662_s12  ;;  %p937_p4 = scmp.eq.s32.totalorder %s726_s16, 0 }
   0xc   : > { %s742_s21 = scalar_select %p68_p1, %s670_s14, %s70_s19  }
   0xd   : > { %p744_p5 = por %p78_p2, %p77_p0  ;;  %p750_p6 = por %p937_p4, %p83_p3 }
   0xe   : > { %p107_p7 = scmp.eq.s32.totalorder %s726_s16, 1  ;;  %p113_p8 = scmp.eq.s32.totalorder %s418_s17, 1 }
   0xf   : > { %s942_s22 = scalar_select %p744_p5, 1, 0 }
  0x10   : > { %s943_s23 = scalar_select %p750_p6, 1, 0 }
  0x11   : > { %p419_p9 = scmp.ge.s32.totalorder %s674_s15, 1  ;;  %p120_p10 = scmp.lt.s32.totalorder %s674_s15, 3 }
  0x12   : > { %p757_p11 = por %p107_p7, %p77_p0  ;;  %p761_p12 = por %p113_p8, %p83_p3 }
  0x13   : > { %p765_p13 = pnand %p419_p9, %p120_p10  ;;  %p484_p4 = scmp.lt.s32.totalorder %s674_s15, 2 }
  0x14   : > { %s944_s24 = scalar_select %p757_p11, 1, 0 }
  0x15   : > { %s945_s25 = scalar_select %p761_p12, 1, 0 }
  0x16   : > { %s946_s26 = scalar_select %p765_p13, 1, 0 }
  0x17   : > { %p467_p2 = pneg %p765_p13  ;;  %s153_s27 = sand.u32 1, %s670_s14  }
  0x18   : > { %p947_p6 = scmp.eq.s32.totalorder %s726_s16, 0  ;;  %p949_p0 = scmp.ne.s32.totalorder %s942_s22, 0 }
  0x19   : > { %s676_s30 = smov [#allocation6]   ;;  %s529_s7 = scalar_lea.hbm %s933_s0, 16 }
  0x1a   : > { %p776_p5 = pnand %p467_p2, %p947_p6  ;;  %p782_p3 = pnand %p484_p4, %p949_p0 }
  0x1b   : > { %s142_s4 = sshll.u32 %s676_s30, 4  ;;  %p530_p6 = scmp.ne.s32.totalorder %s933_s0, %s529_s7  ;;  %s143_s4 = int_to_ptr.vmem [resolvable:$true] %s142_s4 }
  0x1c   : > { %s950_s29 = scalar_select %p782_p3, 1, 0 }
  0x1d   : > { %p531_p7 = pneg %p776_p5  ;;  %p536_p4 = scmp.lt.u32.totalorder %s529_s7, %s933_s0 }
  0x1f   : > { %p532_p8 = pnand %p531_p7, %p530_p6 }
  0x21   : > { %p533_p9 = pneg %p532_p8 }
  0x23   : > { %p538_p10 = pnand %p536_p4, %p533_p9 }
  0x25   : > { %541 = shalt.err (!%p538_p10)
}
  0x26   : > { %s677_s17 = smov [#allocation2]   ;;  %s423_s22 = sshll.u32 %s153_s27, 4 }
  0x27   : > { %470 = dma.hbm_to_smem (!%p776_p5), %s933_s0, 16, %s677_s17, [#allocation5]  }
  0x28   : > { %s542_s6 = scalar_lea.hbm %s934_s1, 64 }
  0x29   : > { %p543_p2 = scmp.ne.s32.totalorder %s934_s1, %s542_s6  ;;  %p549_p8 = scmp.lt.u32.totalorder %s542_s6, %s934_s1 }
  0x2b   : > { %p545_p0 = pnand %p543_p2, %p531_p7 }
  0x2d   : > { %p546_p6 = pneg %p545_p0 }
  0x2f   : > { %p551_p9 = pnand %p549_p8, %p546_p6 }
  0x31   : > { %554 = shalt.err (!%p551_p9)
}
  0x32   : > { %s555_s11 = scalar_lea.vmem %s143_s4, 64  ;;  %p563_p12 = scmp.lt.s32.totalorder %s143_s4, %s143_s4 }
  0x33   : > { %p556_p4 = scmp.ne.s32.totalorder %s143_s4, %s555_s11  ;;  %p564_p11 = scmp.lt.s32.totalorder %s555_s11, %s555_s11 }
  0x35   : > { %p558_p10 = pnand %p556_p4, %p531_p7  ;;  %p565_p13 = por %p564_p11, %p563_p12 }
  0x37   : > { %p559_p1 = pneg %p558_p10 }
  0x39   : > { %p566_p3 = pnand %p565_p13, %p559_p1 }
  0x3b   : > { %569 = shalt.err (!%p566_p3)
}
  0x3c   : > { %473 = dma.hbm_to_vmem [thread:$0]  (!%p776_p5), %s934_s1, 64, %s143_s4, [#allocation3]  }
  0x3d   : > { %s424_s20 = sshll.u32 %s674_s15, 6  ;;  %s157_s8 = scalar_lea.vmem [#allocation7], %s423_s22 }
  0x3e   : > { %s831_s6 = scalar_lea.hbm %s935_s2, %s424_s20  ;;  %s163_s28 = sshll.u32 %s157_s8, 4  ;;  %s833_s28 = int_to_ptr.vmem [resolvable:$true] %s163_s28 }
  0x3f   : > { %s837_s7 = scalar_lea.sflag [#allocation8], %s153_s27  ;;  %s570_s9 = scalar_lea.hbm %s831_s6, 256 }
  0x40   : > { %p571_p11 = scmp.ne.s32.totalorder %s831_s6, %s570_s9  ;;  %p951_p5 = scmp.ne.s32.totalorder %s950_s29, 0 }
  0x41   : > { %s575_s11 = scalar_lea.hbm %s935_s2, 512  ;;  %p576_p3 = scmp.lt.u32.totalorder %s831_s6, %s935_s2 }
  0x42   : > { %p572_p12 = pneg %p951_p5  ;;  %p577_p7 = scmp.lt.u32.totalorder %s575_s11, %s570_s9 }
  0x43   : > { %p579_p0 = scmp.lt.u32.totalorder %s570_s9, %s831_s6 }
  0x44   : > { %p573_p13 = pnand %p572_p12, %p571_p11  ;;  %p578_p2 = por %p577_p7, %p576_p3 }
  0x46   : > { %p574_p1 = pneg %p573_p13  ;;  %p580_p6 = por %p579_p0, %p578_p2 }
  0x48   : > { %p581_p8 = pnand %p580_p6, %p574_p1 }
  0x4a   : > { %584 = shalt.err (!%p581_p8)
}
  0x4b   : > { %s585_s27 = scalar_lea.vmem %s833_s28, 256  ;;  %s678_s19 = smov [#allocation7]  }
  0x4c   : > { %p586_p9 = scmp.ne.s32.totalorder %s833_s28, %s585_s27  ;;  %s590_s20 = sshll.u32 %s678_s19, 4  ;;  %s591_s20 = int_to_ptr.vmem [resolvable:$false] %s590_s20 }
  0x4d   : > { %s592_s30 = scalar_lea.vmem %s591_s20, 512  ;;  %p593_p11 = scmp.lt.s32.totalorder %s833_s28, %s591_s20 }
  0x4e   : > { %p588_p4 = pnand %p586_p9, %p572_p12  ;;  %p594_p13 = scmp.lt.s32.totalorder %s592_s30, %s585_s27 }
  0x50   : > { %p589_p10 = pneg %p588_p4  ;;  %p595_p3 = por %p594_p13, %p593_p11 }
  0x52   : > { %p596_p7 = pnand %p595_p3, %p589_p10 }
  0x54   : > { %599 = shalt.err (!%p596_p7)
}
  0x55   : > { %s679_s5 = smov 128   ;;  %s680_s8 = smov 64  }
  0x56   : > { %s681_s9 = smov 4   ;;  %p952_p12 = scmp.ne.s32.totalorder %s946_s26, 0 }
  0x57   : > { %477 = dma.hbm_to_vmem [thread:$0]  (!%p951_p5), %s831_s6, 256, %s833_s28, %s837_s7, %s679_s5, %s680_s8, %s681_s9  }
  0x58   : > { %175 = sbr.rel (%p952_p12) target bundleno = 345 (0x159), region = 32  ;;  %p953_p1 = scmp.eq.s32.totalorder (!%p952_p12), %s726_s16, 0 }
  0x5f   : > { %645 = dma.done.wait (%p953_p1), [#allocation5], 16   ;;  %p954_p2 = pmov %p953_p1 }
  0x60   : > { %p955_p0 = pmov %p953_p1 }
  0x61   : > { %647 = vsyncadd (%p954_p2), [#allocation5], 4294967280 }
  0x62   : > { %649 = dma.done.wait (%p955_p0), [#allocation3], 64   ;;  %p956_p6 = pmov %p955_p0 }
  0x63   : > { %s876_s4 = sand.u32 1, %s666_s13   ;;  %p957_p5 = scmp.ne.s32.totalorder %s943_s23, 0 }
  0x64   : > { %651 = vsyncadd (%p956_p6), [#allocation3], 4294967232  ;;  %s428_s26 = sshll.u32 %s876_s4, 4  ;;  %s186_s29 = scalar_lea.sflag [#allocation8], %s876_s4 }
  0x65   : > { %s189_s6 = scalar_lea.vmem [#allocation7], %s428_s26 }
  0x66   : > { %653 = dma.done.wait (%p957_p5), %s186_s29, 256  }
  0x67   : > { %655 = vsyncadd (%p957_p5), %s186_s29, 4294967040 }
  0x68   : > { %194 = sfence }
  0x69   : > { %v527_v0 = vld [vmem:[%s189_s6] sm:$0xff]   ;;  %v682_v1 = vmov 0.0   ;;  %v528_v2 = vld [vmem:[%s189_s6 + $0x8] sm:$0x3f]   ;;  %vm234_vm0 = vcmask 1045504   ;;  %vm683_vm1 = vmmov 0  }
  0x6a   : > { %447 = vmatprep.subr.bf16.mxu0 %v682_v1  ;;  %v236_v3 = vsel %vm234_vm0, %v528_v2, 0  ;;  %451 = vmatprep.mubr.msk.bf16.mxu0 %vm683_vm1, %v682_v1  ;;  %v214_v4 = vld [vmem:[#allocation6] sm:$0xf]  ;;  %vm230_vm2 = vcmask 228352   ;;  %s278_s28 = sld [smem:[#allocation2]]  ;;  %s433_s7 = sld [smem:[#allocation2 + $0x1]] }
  0x6b   : > { %448 = vmatpush3.bf16.msra.mxu0 %v527_v0  ;;  %s434_s23 = sld [smem:[#allocation2 + $0x2]]  ;;  %s435_s10 = sld [smem:[#allocation2 + $0x3]] }
  0x6c   : > { %449 = vmatprep.subr.bf16.mxu0 %v682_v1  ;;  %s436_s11 = sld [smem:[#allocation2 + $0x4]]  ;;  %s437_s17 = sld [smem:[#allocation2 + $0x5]] }
  0x6d   : > { %s438_s22 = sld [smem:[#allocation2 + $0x6]]  ;;  %s439_s27 = sld [smem:[#allocation2 + $0x7]] }
  0x6e   : > { %s429_s19 = sshll.u32 %s876_s4, 3  ;;  %s441_s20 = sshll.u32 %s726_s16, 7 }
  0x6f   : > { %450 = vmatpush3.bf16.msra.mxu0 %v236_v3  ;;  %s212_s30 = scalar_lea.vmem [#allocation9], %s429_s19  ;;  %s889_s26 = scalar_lea.hbm %s936_s3, %s441_s20 }
  0x70   : > { %v279_v5 = vstv %s278_s28  ;;  %v283_v6 = vstv %s433_s7  ;;  %s324_s5 = sshll.u32 %s212_s30, 4  ;;  %s311_s16 = scalar_lea.sflag [#allocation4], %s876_s4  ;;  %s891_s5 = int_to_ptr.vmem [resolvable:$true] %s324_s5 }
  0x71   : > { %v287_v7 = vstv %s434_s23  ;;  %v291_v8 = vstv %s435_s10  ;;  %s600_s29 = scalar_lea.vmem %s891_s5, 128  ;;  %p958_p9 = scmp.ne.s32.totalorder %s944_s24, 0 }
  0x72   : > { %452 = vmatmul.mubr.msk.bf16.vlgmr.msra.gmra.mrb[0].mxu0 %vm230_vm2, %v214_v4  ;;  %v295_v9 = vstv %s436_s11  ;;  %v299_v10 = vstv %s437_s17  ;;  %p601_p8 = scmp.ne.s32.totalorder %s891_s5, %s600_s29  ;;  %s684_s6 = smov [#allocation9]  }
  0x73   : > { %v303_v11 = vstv %s438_s22  ;;  %v307_v12 = vstv %s439_s27  ;;  %s604_s28 = sshll.u32 %s684_s6, 4  ;;  %s605_s28 = int_to_ptr.vmem [resolvable:$false] %s604_s28 }
  0x74   : > { %p602_p4 = pnand %p601_p8, %p958_p9  ;;  %s606_s7 = scalar_lea.vmem %s605_s28, 256 }
  0x75   : > { %p607_p11 = scmp.lt.s32.totalorder %s891_s5, %s605_s28  ;;  %p608_p13 = scmp.lt.s32.totalorder %s606_s7, %s600_s29 }
  0x76   : > { %p603_p10 = pneg %p602_p4 }
  0x77   : > { %p609_p3 = por %p608_p13, %p607_p11 }
  0x79   : > { %p610_p7 = pnand %p609_p3, %p603_p10 }
 0x145   : > { %v272_v13 = vpop.f32.mrb[0].mxu0 }
 0x146   : > { %v280_v14 = vadd.f32 %v279_v5, %v272_v13  ;;  %v284_v15 = vadd.f32 %v283_v6, %v272_v13  ;;  %v288_v16 = vadd.f32 %v287_v7, %v272_v13  ;;  %v292_v17 = vadd.f32 %v291_v8, %v272_v13  ;;  %v453_v18 = vpop.f32.mrb[1].mxu0 }
 0x147   : > { %v296_v19 = vadd.f32 %v295_v9, %v272_v13  ;;  %v300_v20 = vadd.f32 %v299_v10, %v272_v13  ;;  %v304_v21 = vadd.f32 %v303_v11, %v272_v13  ;;  %v308_v22 = vadd.f32 %v307_v12, %v272_v13  ;;  %v275_v23 = vpop.f32.mrb[2].mxu0 }
 0x148   : > { %281 = vst [vmem:[%s212_s30] sm:$0x1] %v280_v14  ;;  %285 = vst [vmem:[%s212_s30] sm:$0x2] %v284_v15  ;;  %v454_v24 = vpop.f32.mrb[3].mxu0 }
 0x149   : > { %289 = vst [vmem:[%s212_s30] sm:$0x4] %v288_v16  ;;  %293 = vst [vmem:[%s212_s30] sm:$0x8] %v292_v17 }
 0x14a   : > { %297 = vst [vmem:[%s212_s30] sm:$0x10] %v296_v19  ;;  %301 = vst [vmem:[%s212_s30] sm:$0x20] %v300_v20 }
 0x14b   : > { %305 = vst [vmem:[%s212_s30] sm:$0x40] %v304_v21  ;;  %309 = vst [vmem:[%s212_s30] sm:$0x80] %v308_v22 }
 0x14c   : > { %613 = shalt.err (!%p610_p7)
}
 0x14d   : > { %s614_s4 = scalar_lea.hbm %s889_s26, 128  ;;  %s618_s11 = scalar_lea.hbm %s936_s3, 256 }
 0x14e   : > { %p615_p12 = scmp.ne.s32.totalorder %s889_s26, %s614_s4  ;;  %p619_p0 = scmp.lt.u32.totalorder %s889_s26, %s936_s3 }
 0x14f   : > { %p620_p6 = scmp.lt.u32.totalorder %s618_s11, %s614_s4  ;;  %p622_p8 = scmp.lt.u32.totalorder %s614_s4, %s889_s26 }
 0x150   : > { %p616_p1 = pnand %p615_p12, %p958_p9 }
 0x151   : > { %p621_p5 = por %p620_p6, %p619_p0 }
 0x152   : > { %p617_p2 = pneg %p616_p1 }
 0x153   : > { %p623_p4 = por %p622_p8, %p621_p5 }
 0x155   : > { %p624_p10 = pnand %p623_p4, %p617_p2 }
 0x157   : > { %627 = shalt.err (!%p624_p10)
}
 0x158   : > { %465 = dma.vmem_to_hbm [thread:$0]  (%p958_p9), %s891_s5, 128, %s889_s26, %s311_s16  }
 0x159 PF: > { %s336_s27 = sand.u32 1, %s662_s12   ;;  %p959_p11 = scmp.ne.s32.totalorder %s945_s25, 0 }
 0x15a   : > { %p960_p13 = scmp.ge.s32.totalorder %s674_s15, 2  ;;  %s337_s19 = scalar_lea.sflag [#allocation4], %s336_s27 }
 0x15c   : > { %p479_p3 = pnand %p960_p13, %p959_p11 }
 0x15e   : > { %657 = dma.done.wait (!%p479_p3), %s337_s19, 128  }
 0x15f   : > { %659 = vsyncadd (!%p479_p3), %s337_s19, 4294967168  ;;  %p18_p7 = scmp.ge.s32.totalorder %s730_s18, 4   ;;  %s961_s12 = smov %s666_s13 }
 0x160   : > { %s962_s13 = smov %s670_s14  ;;  %s963_s14 = smov %s742_s21 }
 0x161   : > { %s964_s15 = smov %s730_s18  ;;  %20 = sbr.rel (!%p18_p7) target bundleno = 7 (0x7), region = 87 }
 0x168   :  { %342 = vsyncpa [#allocation3], 1 }
 0x169   :  { %344 = vsyncpa [#allocation3 + $0x1], 1 }
 0x16a   :  { %345 = vsyncpa [#allocation8], 1 }
 0x16b   :  { %347 = vsyncpa [#allocation8 + $0x1], 1 }
 0x16c   :  { %348 = vsyncpa [#allocation4], 1 }
 0x16d   :  { %350 = vsyncpa [#allocation4 + $0x1], 1 }
 0x16e   :  { %351 = vsyncpa [#allocation5], 1 }
 0x16f   :  { %353 = vsyncpa [#allocation5 + $0x1], 1 }

// kernel: gcn_forward.2
= control target key start
LH: loop header
LB: loop body
LE: loop exit
PB: predicated region body
PF: predicated region fallthrough
CT: control target
= control target key end

     0   :  { %7 = vsyncpa [#allocation3], 0  ;;  %s1221_s0 = inlined_call_operand.hbm [shape: bf16[4,16,16], index: 0, kind: input, shape index: {}]   ;;  %s1222_s1 = inlined_call_operand.hbm [shape: bf16[48,16], index: 1, kind: input, shape index: {}]   ;;  %s1223_s2 = inlined_call_operand.hbm [shape: bf16[7,4,16,16], index: 2, kind: output, shape index: {}]  }
   0x1   :  { %9 = vsyncpa [#allocation3 + $0x1], 0 }
   0x2   :  { %10 = vsyncpa [#allocation6], 0 }
   0x3   :  { %11 = vsyncpa [#allocation4], 0 }
   0x4   :  { %13 = vsyncpa [#allocation4 + $0x1], 0  ;;  %s967_s9 = smov 0   ;;  %s969_s10 = smov 0  }
   0x5   :  { %s971_s11 = smov 0   ;;  %s973_s12 = smov 0  }
   0x6   :  { %s975_s13 = smov 0   ;;  %s977_s14 = smov 0  }
   0x7 LB: > { %s622_s15 = sadd.s32 4294967295, %s937_s14   ;;  %s623_s16 = sadd.s32 4294967294, %s937_s14   ;;  %s937_s14 = sphi %s977_s14, %s19_s14   ;;  %s933_s13 = sphi %s975_s13, %s1246_s13   ;;  %s929_s12 = sphi %s973_s12, %s1245_s12   ;;  %s925_s11 = sphi %s971_s11, %s1244_s11   ;;  %s921_s10 = sphi %s969_s10, %s1243_s10   ;;  %s917_s9 = sphi %s967_s9, %s1242_s9  }
   0x8   : > { %p53_p0 = scmp.ne.s32.totalorder %s921_s10, %s917_s9  ;;  %p1001_p1 = scmp.eq.s32.totalorder %s622_s15, 0 }
   0x9   : > { %p1005_p2 = scmp.eq.s32.totalorder %s622_s15, 3  ;;  %p106_p3 = scmp.eq.s32.totalorder %s623_s16, 3 }
   0xa   : > { %s1228_s17 = scalar_select %p1001_p1, 1, 0 }
   0xb   : > { %s1229_s18 = scalar_select %p1005_p2, 1, 0 }
   0xc   : > { %p1011_p4 = por %p1001_p1, %p53_p0  ;;  %p624_p5 = scmp.ge.s32.totalorder %s937_s14, 1 }
   0xd   : > { %p1016_p6 = por %p106_p3, %p53_p0  ;;  %p113_p7 = scmp.lt.s32.totalorder %s937_s14, 5 }
   0xe   : > { %s1230_s19 = scalar_select %p1011_p4, 1, 0 }
   0xf   : > { %s1231_s20 = scalar_select %p1016_p6, 1, 0 }
  0x10   : > { %p1021_p8 = pnand %p624_p5, %p113_p7  ;;  %s939_s22 = smov [#allocation5]  }
  0x11   : > { %s125_s23 = sshll.u32 %s939_s22, 4  ;;  %s31_s25 = sadd.s32 1, %s933_s13  ;;  %s126_s23 = int_to_ptr.vmem [resolvable:$true] %s125_s23 }
  0x12   : > { %s1232_s21 = scalar_select %p1021_p8, 1, 0 }
  0x13   : > { %p742_p9 = pneg %p1021_p8  ;;  %s821_s28 = scalar_lea.hbm %s1222_s1, 384 }
  0x14   : > { %p822_p11 = scmp.ne.s32.totalorder %s1222_s1, %s821_s28  ;;  %p828_p3 = scmp.lt.u32.totalorder %s821_s28, %s1222_s1 }
  0x15   : > { %p1029_p10 = pnand %p742_p9, %p1001_p1 }
  0x17   : > { %p823_p12 = pneg %p1029_p10 }
  0x19   : > { %p824_p13 = pnand %p823_p12, %p822_p11 }
  0x1b   : > { %p825_p0 = pneg %p824_p13 }
  0x1d   : > { %p830_p5 = pnand %p828_p3, %p825_p0 }
  0x1f   : > { %833 = shalt.err (!%p830_p5)
}
  0x20   : > { %s834_s5 = scalar_lea.vmem %s126_s23, 384  ;;  %p842_p1 = scmp.lt.s32.totalorder %s126_s23, %s126_s23 }
  0x21   : > { %p835_p7 = scmp.ne.s32.totalorder %s126_s23, %s834_s5  ;;  %p843_p4 = scmp.lt.s32.totalorder %s834_s5, %s834_s5 }
  0x23   : > { %p837_p9 = pnand %p835_p7, %p823_p12  ;;  %p844_p8 = por %p843_p4, %p842_p1 }
  0x25   : > { %p838_p6 = pneg %p837_p9 }
  0x27   : > { %p845_p2 = pnand %p844_p8, %p838_p6 }
  0x29   : > { %848 = shalt.err (!%p845_p2)
}
  0x2a   : > { %s940_s6 = smov 64   ;;  %s941_s7 = smov 4  }
  0x2b   : > { %745 = dma.hbm_to_vmem [thread:$0]  (!%p1029_p10), %s1222_s1, 384, %s126_s23, [#allocation6], %s940_s6, %s940_s6, %s941_s7  }
  0x2c   : > { %p33_p1 = scmp.ge.s32.totalorder %s31_s25, 4  ;;  %s40_s16 = sadd.s32 1, %s925_s11 }
  0x2d   : > { %p47_p2 = scmp.ne.s32.totalorder %s925_s11, %s921_s10  ;;  %p48_p4 = scmp.eq.s32.totalorder %s937_s14, 0 }
  0x2e   : > { %s1248_s25 = smov (%p33_p1, %s31_s25), 0  ;;  %p1235_p8 = scmp.ne.s32.totalorder %s1229_s18, 0 }
  0x2f   : > { %p1059_p6 = por %p48_p4, %p47_p2  ;;  %s35_s26 = ssub.s32 %s933_s13, %s1248_s25 }
  0x30   : > { %p1065_p11 = por %p1235_p8, %p47_p2  ;;  %p755_p12 = scmp.lt.s32.totalorder %s937_s14, 4 }
  0x31   : > { %p38_p10 = scmp.eq.s32.totalorder %s35_s26, 0  ;;  %s139_s23 = sand.u32 1, %s925_s11  }
  0x32   : > { %s627_s27 = sshll.u32 %s139_s23, 3  ;;  %s671_s29 = sshll.u32 %s933_s13, 7 }
  0x33   : > { %s1074_s28 = scalar_select %p38_p10, %s925_s11, %s40_s16  }
  0x34   : > { %s1080_s4 = scalar_lea.hbm %s1221_s0, %s671_s29  ;;  %s143_s18 = scalar_lea.vmem [#allocation2], %s627_s27 }
  0x35   : > { %s151_s5 = sshll.u32 %s143_s18, 4  ;;  %p1086_p13 = pnand %p755_p12, %p1059_p6  ;;  %s1082_s5 = int_to_ptr.vmem [resolvable:$true] %s151_s5 }
  0x36   : > { %s1090_s15 = scalar_lea.sflag [#allocation3], %s139_s23  ;;  %s849_s16 = scalar_lea.hbm %s1080_s4, 128 }
  0x37   : > { %p850_p0 = scmp.ne.s32.totalorder %s1080_s4, %s849_s16  ;;  %p851_p3 = pneg %p1086_p13 }
  0x38   : > { %s854_s22 = scalar_lea.hbm %s1221_s0, 512  ;;  %p855_p9 = scmp.lt.u32.totalorder %s1080_s4, %s1221_s0 }
  0x39   : > { %p852_p5 = pnand %p851_p3, %p850_p0  ;;  %p856_p1 = scmp.lt.u32.totalorder %s854_s22, %s849_s16 }
  0x3a   : > { %p858_p4 = scmp.lt.u32.totalorder %s849_s16, %s1080_s4 }
  0x3b   : > { %p853_p7 = pneg %p852_p5  ;;  %p857_p2 = por %p856_p1, %p855_p9 }
  0x3d   : > { %p859_p6 = por %p858_p4, %p857_p2 }
  0x3f   : > { %p860_p8 = pnand %p859_p6, %p853_p7 }
  0x41   : > { %863 = shalt.err (!%p860_p8)
}
  0x42   : > { %s864_s23 = scalar_lea.vmem %s1082_s5, 128  ;;  %s942_s3 = smov [#allocation2]  }
  0x43   : > { %p865_p12 = scmp.ne.s32.totalorder %s1082_s5, %s864_s23  ;;  %s869_s18 = sshll.u32 %s942_s3, 4  ;;  %s870_s18 = int_to_ptr.vmem [resolvable:$false] %s869_s18 }
  0x44   : > { %s871_s26 = scalar_lea.vmem %s870_s18, 256  ;;  %p872_p5 = scmp.lt.s32.totalorder %s1082_s5, %s870_s18 }
  0x45   : > { %p867_p10 = pnand %p865_p12, %p851_p3  ;;  %p873_p9 = scmp.lt.s32.totalorder %s871_s26, %s864_s23 }
  0x47   : > { %p868_p0 = pneg %p867_p10  ;;  %p874_p1 = por %p873_p9, %p872_p5 }
  0x49   : > { %p875_p2 = pnand %p874_p1, %p868_p0 }
  0x4b   : > { %878 = shalt.err (!%p875_p2)
}
  0x4c   : > { %749 = dma.hbm_to_vmem [thread:$0]  (!%p1086_p13), %s1080_s4, 128, %s1082_s5, %s1090_s15, %s940_s6, %s940_s6, %s941_s7  }
  0x4d   : > { %p1238_p3 = scmp.ne.s32.totalorder %s1232_s21, 0 }
  0x4e   : > { %s1124_s16 = sand.u32 (!%p1238_p3), 1, %s921_s10   ;;  %p1239_p7 = scmp.ne.s32.totalorder (!%p1238_p3), %s1230_s19, 0 }
  0x4f   : > { %163 = sbr.rel (%p1238_p3) target bundleno = 558 (0x22e), region = 28  ;;  %s631_s27 = sshll.u32 (!%p1238_p3), %s1124_s16, 3 }
  0x50   : > { %s166_s22 = scalar_lea.sflag (!%p1238_p3), [#allocation3], %s1124_s16  ;;  %s169_s29 = scalar_lea.vmem (!%p1238_p3), [#allocation2], %s631_s27 }
  0x56   : > { %904 = dma.done.wait (%p1239_p7), %s166_s22, 128  }
  0x57   : > { %906 = vsyncadd (%p1239_p7), %s166_s22, 4294967168  ;;  %p1240_p4 = scmp.ne.s32.totalorder %s1228_s17, 0 }
  0x59   : > { %908 = dma.done.wait (%p1240_p4), [#allocation6], 384  }
  0x5a   : > { %910 = vsyncadd (%p1240_p4), [#allocation6], 4294966912  ;;  %v943_v0 = vmov 0.0   ;;  %vm944_vm0 = vmmov 0   ;;  %s727_s21 = smul.u32 56, %s1124_s16  ;;  %vm197_vm1 = vcmask 125952  }
  0x5b   : > { %695 = vmatprep.subr.bf16.mxu0 %v943_v0  ;;  %697 = vmatprep.mubr.msk.bf16.mxu0 %vm944_vm0, %v943_v0  ;;  %v195_v1 = vld [vmem:[%s169_s29] sm:$0xf]  ;;  %v196_v2 = vld [vmem:[%s169_s29 + $0x4] sm:$0xf]  ;;  %v818_v4 = vld [vmem:[#allocation5] sm:$0xff]   ;;  %vm227_vm2 = vcmask 130048  }
  0x5c   : > { %709 = vmatprep.subr.bf16.mxu1 %v943_v0  ;;  %711 = vmatprep.mubr.msk.bf16.mxu1 %vm944_vm0, %v943_v0  ;;  %s1139_s19 = scalar_lea.vmem [#allocation7], %s727_s21  ;;  %v636_v3 = vcombine.low %v195_v1, %v196_v2  ;;  %v819_v5 = vld [vmem:[#allocation5 + $0x8] sm:$0xff]   ;;  %v820_v6 = vld [vmem:[#allocation5 + $0x10] sm:$0xff]   ;;  %s484_s17 = scalar_lea.sflag [#allocation4], %s1124_s16 }
  0x5d   : > { %198 = vst.msk [vmem:[%s1139_s19] sm:$0xf] %vm197_vm1, %v195_v1  ;;  %199 = vst.msk [vmem:[%s1139_s19 + $0x4] sm:$0xf] %vm197_vm1, %v196_v2 }
  0x5e   : > { %696 = vmatpush3.bf16.msra.mxu0 %v636_v3 }
  0x61   : > { %698 = vmatmul.mubr.msk.bf16.vlgmr.msra.gmra.mrb[0].mxu0 %vm227_vm2, %v818_v4 }
  0x62   : > { %701 = vmatprep.mubr.msk.bf16.mxu0 %vm944_vm0, %v943_v0 }
  0x69   : > { %702 = vmatmul.mubr.msk.bf16.gmra.mrb[4].mxu0 %vm227_vm2, %v819_v5 }
  0x6a   : > { %705 = vmatprep.mubr.msk.bf16.mxu0 %vm944_vm0, %v943_v0 }
  0x71   : > { %706 = vmatmul.mubr.msk.bf16.gmra.mrb[8].mxu0 %vm227_vm2, %v820_v6 }
 0x134   : > { %v271_v7 = vpop.f32.mrb[0].mxu0 }
 0x135   : > { %v672_v8 = vpack.c.bf16 %v271_v7, %v271_v7  ;;  %v699_v9 = vpop.f32.mrb[1].mxu0 }
 0x136   : > { %v274_v10 = vpop.f32.mrb[2].mxu0 }
 0x137   : > { %642 = vst.msk [vmem:[%s1139_s19 + $0x8] sm:$0xf] %vm197_vm1, %v672_v8  ;;  %v673_v11 = vpack.c.bf16 %v274_v10, %v274_v10  ;;  %v700_v12 = vpop.f32.mrb[3].mxu0  ;;  %v294_v13 = vpack.c.bf16 %v274_v10, %v271_v7 }
 0x139   : > { %643 = vst.msk [vmem:[%s1139_s19 + $0xc] sm:$0xf] %vm197_vm1, %v673_v11  ;;  %710 = vmatpush3.bf16.msra.mxu1 %v294_v13 }
 0x13a   : > { %715 = vmatprep.subr.bf16.mxu1 %v943_v0 }
 0x13c   : > { %v279_v14 = vpop.f32.mrb[4].mxu0  ;;  %712 = vmatmul.mubr.msk.bf16.vlgmr.msra.gmra.mrb[0].mxu1 %vm227_vm2, %v818_v4 }
 0x13d   : > { %v676_v15 = vpack.c.bf16 %v279_v14, %v279_v14  ;;  %v703_v16 = vpop.f32.mrb[5].mxu0  ;;  %717 = vmatprep.mubr.msk.bf16.mxu1 %vm944_vm0, %v943_v0 }
 0x13e   : > { %v282_v17 = vpop.f32.mrb[6].mxu0 }
 0x13f   : > { %651 = vst.msk [vmem:[%s1139_s19 + $0x18] sm:$0xf] %vm197_vm1, %v676_v15  ;;  %v357_v18 = vpack.c.bf16 %v282_v17, %v279_v14  ;;  %v677_v19 = vpack.c.bf16 %v282_v17, %v282_v17  ;;  %v704_v20 = vpop.f32.mrb[7].mxu0 }
 0x141   : > { %652 = vst.msk [vmem:[%s1139_s19 + $0x1c] sm:$0xf] %vm197_vm1, %v677_v19  ;;  %716 = vmatpush3.bf16.msra.mxu1 %v357_v18 }
 0x142   : > { %721 = vmatprep.subr.bf16.mxu1 %v943_v0 }
 0x144   : > { %v287_v21 = vpop.f32.mrb[8].mxu0  ;;  %718 = vmatmul.mubr.msk.bf16.vlgmr.msra.gmra.mrb[4].mxu1 %vm227_vm2, %v819_v5 }
 0x145   : > { %v680_v22 = vpack.c.bf16 %v287_v21, %v287_v21  ;;  %v707_v23 = vpop.f32.mrb[9].mxu0  ;;  %723 = vmatprep.mubr.msk.bf16.mxu1 %vm944_vm0, %v943_v0 }
 0x146   : > { %v290_v24 = vpop.f32.mrb[10].mxu0 }
 0x147   : > { %660 = vst.msk [vmem:[%s1139_s19 + $0x28] sm:$0xf] %vm197_vm1, %v680_v22  ;;  %v420_v25 = vpack.c.bf16 %v290_v24, %v287_v21  ;;  %v681_v26 = vpack.c.bf16 %v290_v24, %v290_v24  ;;  %v708_v27 = vpop.f32.mrb[11].mxu0 }
 0x149   : > { %661 = vst.msk [vmem:[%s1139_s19 + $0x2c] sm:$0xf] %vm197_vm1, %v681_v26  ;;  %722 = vmatpush3.bf16.msra.mxu1 %v420_v25 }
 0x14c   : > { %724 = vmatmul.mubr.msk.bf16.vlgmr.msra.gmra.mrb[8].mxu1 %vm227_vm2, %v820_v6 }
 0x20f   : > { %v339_v28 = vpop.f32.mrb[0].mxu1 }
 0x210   : > { %v674_v29 = vpack.c.bf16 %v339_v28, %v339_v28  ;;  %v713_v30 = vpop.f32.mrb[1].mxu1 }
 0x211   : > { %v342_v31 = vpop.f32.mrb[2].mxu1 }
 0x212   : > { %647 = vst.msk [vmem:[%s1139_s19 + $0x10] sm:$0xf] %vm197_vm1, %v674_v29  ;;  %v675_v32 = vpack.c.bf16 %v342_v31, %v342_v31  ;;  %v714_v33 = vpop.f32.mrb[3].mxu1 }
 0x214   : > { %648 = vst.msk [vmem:[%s1139_s19 + $0x14] sm:$0xf] %vm197_vm1, %v675_v32 }
 0x217   : > { %v402_v34 = vpop.f32.mrb[4].mxu1 }
 0x218   : > { %v678_v35 = vpack.c.bf16 %v402_v34, %v402_v34  ;;  %v719_v36 = vpop.f32.mrb[5].mxu1 }
 0x219   : > { %v405_v37 = vpop.f32.mrb[6].mxu1 }
 0x21a   : > { %656 = vst.msk [vmem:[%s1139_s19 + $0x20] sm:$0xf] %vm197_vm1, %v678_v35  ;;  %v679_v38 = vpack.c.bf16 %v405_v37, %v405_v37  ;;  %v720_v39 = vpop.f32.mrb[7].mxu1 }
 0x21c   : > { %657 = vst.msk [vmem:[%s1139_s19 + $0x24] sm:$0xf] %vm197_vm1, %v679_v38 }
 0x21f   : > { %v465_v40 = vpop.f32.mrb[8].mxu1 }
 0x220   : > { %v682_v41 = vpack.c.bf16 %v465_v40, %v465_v40  ;;  %v725_v42 = vpop.f32.mrb[9].mxu1 }
 0x221   : > { %v468_v43 = vpop.f32.mrb[10].mxu1 }
 0x222   : > { %665 = vst.msk [vmem:[%s1139_s19 + $0x30] sm:$0xf] %vm197_vm1, %v682_v41  ;;  %v683_v44 = vpack.c.bf16 %v468_v43, %v468_v43  ;;  %v726_v45 = vpop.f32.mrb[11].mxu1 }
 0x224   : > { %666 = vst.msk [vmem:[%s1139_s19 + $0x34] sm:$0xf] %vm197_vm1, %v683_v44 }
 0x225   : > { %s684_s6 = sshll.u32 %s929_s12, 7  ;;  %s514_s7 = sshll.u32 %s1139_s19, 4  ;;  %s515_s7 = int_to_ptr.vmem [resolvable:$true] %s514_s7 }
 0x226   : > { %s497_s8 = scalar_lea.hbm %s1223_s2, %s684_s6  ;;  %s945_s15 = smov 128  }
 0x227   : > { %734 = sst [smem:[#allocation9]] (%p1065_p11), %s945_s15  ;;  %s946_s30 = smov 512  }
 0x228   : > { %735 = sst [smem:[#allocation9 + $0x1]] (%p1065_p11), %s946_s30  ;;  %s947_s23 = smov 2  }
 0x229   : > { %736 = sst [smem:[#allocation9 + $0x2]] (%p1065_p11), %s947_s23  ;;  %s948_s3 = smov 64  }
 0x22a   : > { %737 = sst [smem:[#allocation9 + $0x3]] (%p1065_p11), %s948_s3  ;;  %s949_s12 = smov 4  }
 0x22b   : > { %738 = sst [smem:[#allocation9 + $0x4]] (%p1065_p11), %s948_s3  ;;  %s950_s18 = smov [#allocation8]  }
 0x22c   : > { %739 = sst [smem:[#allocation9 + $0x5]] (%p1065_p11), %s949_s12  ;;  %s951_s26 = smov 0  }
 0x22d   : > { %740 = dma.general (%p1065_p11), %s515_s7, 896, %s497_s8, %s484_s17, %s950_s18, [#allocation9], %s951_s26, 0  }
 0x22e PF: > { %p757_p13 = scmp.ge.s32.totalorder %s937_s14, 2  ;;  %s542_s16 = sand.u32 1, %s917_s9  }
 0x22f   : > { %p1241_p6 = scmp.ne.s32.totalorder %s1231_s20, 0  ;;  %s543_s27 = scalar_lea.sflag [#allocation4], %s542_s16 }
 0x231   : > { %p751_p8 = pnand %p757_p13, %p1241_p6 }
 0x233   : > { %912 = dma.done.wait (!%p751_p8), %s543_s27, 896  }
 0x234   : > { %914 = vsyncadd (!%p751_p8), %s543_s27, 4294966400  ;;  %s19_s14 = sadd.s32 1, %s937_s14   ;;  %s1242_s9 = smov %s921_s10 }
 0x235   : > { %p16_p12 = scmp.ge.s32.totalorder %s19_s14, 6   ;;  %s1243_s10 = smov %s925_s11 }
 0x236   : > { %s1244_s11 = smov %s1074_s28  ;;  %s1245_s12 = smov %s933_s13 }
 0x237   : > { %s1246_s13 = smov %s1248_s25  ;;  %18 = sbr.rel (!%p16_p12) target bundleno = 7 (0x7), region = 88 }
 0x23e   :  { %548 = vsyncpa [#allocation3], 1 }
 0x23f   :  { %550 = vsyncpa [#allocation3 + $0x1], 1 }
 0x240   :  { %551 = vsyncpa [#allocation6], 1 }
 0x241   :  { %552 = vsyncpa [#allocation4], 1 }
 0x242   :  { %554 = vsyncpa [#allocation4 + $0x1], 1 }

</bundles_post_ra>
